<compile_context>
chip_gen: v5e
topology: v5e:2x2
jax: 0.10.0
libtpu: 0.0.40
codegen_flags: <defaults>
</compile_context>

<pallas_src>
import jax
import jax.numpy as jnp
from jax.experimental import pallas as pl
from jax.experimental.pallas import tpu as pltpu


_LANE = 128
_MAX_COLS = 8192  # lane-dense slab width cap (64 * 128)


def _identity_kernel(x_ref, o_ref):
    # Pure copy of the current VMEM tile.
    o_ref[...] = x_ref[...]


def _sublane_multiple(dtype) -> int:
    """Sublane packing multiple for the dtype (8 for 32-bit, 16 bf16, 32 int8/fp8)."""
    itemsize = jnp.dtype(dtype).itemsize
    return {1: 32, 2: 16, 4: 8}.get(itemsize, 8)


def _chip_tuning():
    """Generation-aware (block_bytes, vmem_limit_bytes) from the physical VMEM size."""
    vmem_cap = 0
    try:
        info = pltpu.get_tpu_info()
        for name in ("vmem_capacity_bytes", "vmem_bytes", "vmem_size_bytes"):
            v = getattr(info, name, None)
            if isinstance(v, int) and v > 0:
                vmem_cap = v
                break
    except Exception:
        pass
    if vmem_cap <= 0:
        vmem_cap = 64 * 1024 * 1024  # conservative default: v7x per-TC VMEM
    if vmem_cap <= 64 * 1024 * 1024:
        # v7x-class: 64 MiB VMEM, ~3.2 TB/s HBM.  4x block (in+out double
        # buffered) = 24 MiB << 48 MiB scoped limit.
        return 6 * 1024 * 1024, 48 * 1024 * 1024
    # v5e / v6e: 128 MiB physical VMEM.  4x block = 32 MiB <= 64 MiB limit.
    return 8 * 1024 * 1024, 64 * 1024 * 1024


def _choose_layout(total, dtype, target_block_bytes):
    """Pick (rows, cols, block_rows, block_cols) for a lane-dense, VMEM-friendly tiling."""
    itemsize = jnp.dtype(dtype).itemsize
    sub = _sublane_multiple(dtype)

    # --- Pick a lane-dense 2-D view -------------------------------------
    cols = 0
    if total % _LANE == 0:
        groups = total // _LANE
        for k in range(min(_MAX_COLS // _LANE, groups), 0, -1):
            if groups % k == 0:
                cols = k * _LANE
                break
    if cols == 0:
        # Not a multiple of 128: largest divisor in [128, _MAX_COLS].  Only the
        # final vreg lane-column of each row is masked (>= ~97% lane use).
        for d in range(min(_MAX_COLS, total), _LANE - 1, -1):
            if total % d == 0:
                cols = d
                break

    if cols == 0:
        # Degenerate totals (prime-ish or < 128): single row tiled along the
        # lane axis with multiple-of-128 blocks.  Never collapse to (total, 1).
        rows, cols, block_rows = 1, total, 1
        if total <= _LANE:
            block_cols = total
        else:
            # A (1, C) VMEM tile occupies 8 sublanes per 128 lanes -> 8x footprint,
            # so derate the block target accordingly.
            block_cols = max(_LANE, (target_block_bytes // (8 * itemsize * _LANE)) * _LANE)
            block_cols = min(block_cols, pl.cdiv(total, _LANE) * _LANE)
        return rows, cols, block_rows, block_cols

    rows = total // cols
    row_bytes = cols * itemsize

    if rows <= sub:
        return rows, cols, rows, cols  # full-extent sublane dim: always legal

    target = max(sub, (target_block_bytes // row_bytes // sub) * sub)
    target = min(target, (rows // sub) * sub)
    # Keep >= 2 grid steps on large arrays so both v7x TensorCores get work.
    if rows * row_bytes > 4 * 1024 * 1024 and 2 * target > rows:
        target = max(sub, ((rows // 2) // sub) * sub)
    # Prefer a block_rows that divides rows evenly (no sublane-masked tail
    # block), but never shrink below half the target just to divide evenly.
    block_rows = target
    for br in range(target, max(sub, target // 2) - 1, -sub):
        if rows % br == 0:
            block_rows = br
            break
    return rows, cols, block_rows, cols


def _pallas_identity_copy(x):
    """Explicit Pallas HBM->VMEM->HBM copy producing a fresh output buffer."""
    orig_shape = x.shape
    dtype = x.dtype
    total = x.size
    if total == 0:
        return x

    block_bytes, vmem_limit = _chip_tuning()
    rows, cols, block_rows, block_cols = _choose_layout(total, dtype, block_bytes)
    x2d = x.reshape(rows, cols)  # metadata-only reshape on a contiguous array

    grid = (pl.cdiv(rows, block_rows), pl.cdiv(cols, block_cols))
    nbytes = total * jnp.dtype(dtype).itemsize

    out2d = pl.pallas_call(
        _identity_kernel,
        out_shape=jax.ShapeDtypeStruct((rows, cols), dtype),
        grid_spec=pltpu.PrefetchScalarGridSpec(
            num_scalar_prefetch=0,
            grid=grid,
            in_specs=[pl.BlockSpec((block_rows, block_cols), lambda i, j: (i, j))],
            out_specs=pl.BlockSpec((block_rows, block_cols), lambda i, j: (i, j)),
        ),
        cost_estimate=pl.CostEstimate(
            flops=0, transcendentals=0, bytes_accessed=2 * nbytes),
        compiler_params=pltpu.CompilerParams(
            dimension_semantics=("parallel", "parallel"),  # shard across TCs on v7x
            vmem_limit_bytes=vmem_limit,
        ),
    )(x2d)

    return out2d.reshape(orig_shape)


def dynamo_forward(x, *, materialize=False):
    """Forward pass of Dynamo: the identity.

    Default: returns `x` untouched (zero HBM traffic — exact module semantics
    and the fastest possible implementation).  `materialize=True` runs the
    Pallas copy kernel to produce a distinct output buffer; no
    input_output_aliases is used so `x` remains valid and XLA inserts no
    defensive copy.
    """
    if not materialize:
        return x
    return _pallas_identity_copy(x)


if __name__ == "__main__":
    key = jax.random.PRNGKey(0)
    # Small NCHW-style input, consistent with a conv-ish module.
    x = jax.random.normal(key, (2, 4, 16, 16), dtype=jnp.float32)

    # Default path: true identity, zero data movement.
    y_fast = dynamo_forward(x)

    # Explicit Pallas kernel path (runs the copy kernel once on the TPU).
    y_kernel = dynamo_forward(x, materialize=True)
    y_kernel = jax.block_until_ready(y_kernel)

    assert y_fast.shape == x.shape and y_fast.dtype == x.dtype
    assert y_kernel.shape == x.shape and y_kernel.dtype == x.dtype
    assert bool(jnp.all(y_fast == x))
    assert bool(jnp.all(y_kernel == x))

    print("KERNEL_OK")
</pallas_src>

<mosaic_0001>
module attributes {stable_mosaic.version = 11 : i64} {
  func.func @_identity_kernel(%arg0: i32, %arg1: i32, %arg2: memref<1x2048xf32, #tpu.memory_space<vmem>>, %arg3: memref<1x2048xf32, #tpu.memory_space<vmem>>) attributes {dimension_semantics = [#tpu.dimension_semantics<parallel>, #tpu.dimension_semantics<parallel>], iteration_bounds = array<i64: 1, 1>, scalar_prefetch = 0 : i64, scratch_operands = 0 : i64, tpu.core_type = #tpu.core_type<tc>, window_params = [{transform_indices = @transform_0, window_bounds = array<i64: 1, 2048>}, {transform_indices = @transform_1, window_bounds = array<i64: 1, 2048>}]} {
    %c0 = arith.constant 0 : index
    %c0_0 = arith.constant 0 : index
    %0 = vector.load %arg2[%c0, %c0_0] : memref<1x2048xf32, #tpu.memory_space<vmem>>, vector<1x2048xf32>
    %c0_1 = arith.constant 0 : index
    %c0_2 = arith.constant 0 : index
    %1 = vector.load %arg3[%c0_1, %c0_2] : memref<1x2048xf32, #tpu.memory_space<vmem>>, vector<1x2048xf32>
    tpu.vector_store %arg3[%c0_1, %c0_2], %0 {strides = array<i32>} : memref<1x2048xf32, #tpu.memory_space<vmem>>, vector<1x2048xf32>,
    return
  }
  func.func @transform_0(%arg0: i32, %arg1: i32) -> (i32, i32) {
    %c0_i32 = arith.constant 0 : i32
    return %arg0, %arg1 : i32, i32
  }
  func.func @transform_1(%arg0: i32, %arg1: i32) -> (i32, i32) {
    %c0_i32 = arith.constant 0 : i32
    return %arg0, %arg1 : i32, i32
  }
}

</mosaic_0001>

<bundles_post_ra>
// kernel: tpu_custom_call.1
= control target key start
LH: loop header
LB: loop body
LE: loop exit
PB: predicated region body
PF: predicated region fallthrough
CT: control target
= control target key end

     0   :  { %6 = vsyncpa [#allocation3], 0  ;;  %s116_s0 = inlined_call_operand.hbm [shape: f32[1,2048], index: 0, kind: input, shape index: {}]   ;;  %s117_s1 = inlined_call_operand.hbm [shape: f32[1,2048], index: 1, kind: output, shape index: {}]  }
   0x1   :  { %7 = vsyncpa [#allocation4], 0  ;;  %s13_s8 = sshll.u32 %s116_s0, 4  ;;  %s98_s9 = smov [#allocation2]   ;;  %s14_s8 = int_to_ptr.hbm [resolvable:$true] %s13_s8 }
   0x2   :  { %s15_s10 = sshll.u32 %s98_s9, 4  ;;  %s16_s10 = int_to_ptr.vmem [resolvable:$true] %s15_s10 }
   0x3   :  { %18 = dma.hbm_to_vmem [thread:$0]  %s14_s8, 256, %s16_s10, [#allocation3]  }
   0x4   :  { %94 = dma.done.wait [#allocation3], 256  }
   0x5   :  { %95 = vsyncadd [#allocation3], 4294967040  ;;  %s99_s11 = smov [#allocation5]   ;;  %s34_s15 = sshll.u32 %s117_s1, 4  ;;  %v23_v0 = vld [vmem:[#allocation2] sm:$0xff]  ;;  %v24_v1 = vld [vmem:[#allocation2 + $0x8] sm:$0xff]  ;;  %s35_s15 = int_to_ptr.hbm [resolvable:$true] %s34_s15 }
   0x6   :  { %s32_s12 = sshll.u32 %s99_s11, 4  ;;  %25 = vst [vmem:[#allocation5] sm:$0xff] %v23_v0  ;;  %s33_s12 = int_to_ptr.vmem [resolvable:$true] %s32_s12 }
   0x7   :  { %26 = vst [vmem:[#allocation5 + $0x8] sm:$0xff] %v24_v1 }
   0x8   :  { %37 = dma.vmem_to_hbm [thread:$0]  %s33_s12, 256, %s35_s15, [#allocation4]  }
   0x9   :  { %96 = dma.done.wait [#allocation4], 256  }
   0xa   :  { %97 = vsyncadd [#allocation4], 4294967040 }
   0xb   :  { %42 = vsyncpa [#allocation3], 1 }
   0xc   :  { %43 = vsyncpa [#allocation4], 1 }

</bundles_post_ra>
